<compile_context>
chip_gen: v6e
topology: v6e:2x2x1
jax: 0.10.0
libtpu: 0.0.40
codegen_flags: <defaults>
</compile_context>

<pallas_src>
import functools

import jax
import jax.numpy as jnp
from jax.experimental import pallas as pl
from jax.experimental.pallas import tpu as pltpu


# ----------------------------------------------------------------------------
# Kernels
# ----------------------------------------------------------------------------
def _linear_single_block_kernel(x_ref, w_ref, b_ref, o_ref):
    # x_ref: (M, K), w_ref: (K, N), b_ref: (1, N) f32, o_ref: (M, N)
    o_ref[...] = (
        jnp.dot(x_ref[...], w_ref[...], preferred_element_type=jnp.float32)
        + b_ref[...]
    ).astype(o_ref.dtype)


def _linear_tiled_kernel(x_ref, w_ref, b_ref, o_ref, acc_ref):
    # x_ref: (tm, tk), w_ref: (tk, tn), b_ref: (1, tn) f32, o_ref: (tm, tn)
    # acc_ref: (tm, tn) f32 scratch, resident across the k (reduction) axis.
    k = pl.program_id(2)

    @pl.when(k == 0)
    def _():
        acc_ref[...] = jnp.zeros_like(acc_ref)

    acc_ref[...] += jnp.dot(
        x_ref[...], w_ref[...], preferred_element_type=jnp.float32
    )

    @pl.when(k == pl.num_programs(2) - 1)
    def _():
        # Bias (already f32) added once at finalize, then cast + store.
        o_ref[...] = (acc_ref[...] + b_ref[...]).astype(o_ref.dtype)


# ----------------------------------------------------------------------------
# Host-side helpers (all static-shape logic; runs at trace time)
# ----------------------------------------------------------------------------
def _round_up(a: int, m: int) -> int:
    return ((a + m - 1) // m) * m


def _vmem_limit_bytes() -> int:
    """Generation-aware VMEM budget: ~75% of physical VMEM, capped at 112 MiB."""
    try:
        cap = int(pltpu.get_tpu_info().vmem_capacity_bytes)
    except Exception:
        cap = 64 * 1024 * 1024  # conservative fallback (v7x physical size)
    return max(32 * 1024 * 1024, min(int(cap * 0.75), 112 * 1024 * 1024))


def _pick_tile(dim: int, align: int, cap: int, prefer_two_blocks: bool = False) -> int:
    """Pick a tile size (power-of-two multiple of `align`, <= cap) minimizing
    padded waste. Tie-break to the largest tile, unless `prefer_two_blocks`
    and a same-waste candidate keeps >=2 blocks (megacore sharding)."""
    cands = []
    t = align
    while t <= cap:
        cands.append(t)
        t *= 2
    scored = []
    for t in cands:
        nblk = -(-dim // t)
        scored.append((nblk * t - dim, t, nblk))
    min_waste = min(s[0] for s in scored)
    best = [s for s in scored if s[0] == min_waste]
    if prefer_two_blocks:
        multi = [s for s in best if s[2] >= 2]
        if multi:
            return max(multi, key=lambda s: s[1])[1]
    return max(best, key=lambda s: s[1])[1]


def _shrink_to_budget(tm, tn, tk, in_bytes, out_bytes, sublane, budget):
    """Shrink (tk first, then tn, then tm) until double-buffered tiles fit."""
    def footprint(tm_, tn_, tk_):
        return (2 * (tm_ * tk_ + tk_ * tn_) * in_bytes   # double-buffered x, W
                + 2 * tm_ * tn_ * out_bytes               # double-buffered out
                + tm_ * tn_ * 4                           # f32 accumulator
                + 2 * tn_ * 4)                            # bias tile

    while footprint(tm, tn, tk) > budget and tk > 128:
        tk //= 2
    while footprint(tm, tn, tk) > budget and tn > 128:
        tn //= 2
    while footprint(tm, tn, tk) > budget and tm > sublane:
        tm //= 2
    return tm, tn, tk


# ----------------------------------------------------------------------------
# Public API
# ----------------------------------------------------------------------------
def prepare_linear_params(weight, bias, compute_dtype=None):
    """One-time layout prep (call once, OUTSIDE the per-call path):
    PyTorch (N, K) weight -> MXU-canonical (K, N); bias -> (1, N) f32."""
    w_t = jnp.asarray(weight).T
    if compute_dtype is not None:
        w_t = w_t.astype(compute_dtype)
    b2d = jnp.asarray(bias).reshape(1, -1).astype(jnp.float32)
    return w_t, b2d


@functools.partial(jax.jit, static_argnames=("compute_dtype",))
def module_with_unused_submodules_forward(x, w_t, bias2d, *, compute_dtype=None):
    """y = x @ W^T + b, with W pre-transposed to (K, N) and bias as (1, N) f32.

    compute_dtype=jnp.bfloat16 is recommended for large shapes (native MXU
    throughput with f32 accumulation); default keeps the input dtype.
    """
    M, K = x.shape
    Kw, N = w_t.shape
    assert K == Kw, "input_dim mismatch"
    out_dtype = x.dtype

    if compute_dtype is not None:
        x = x.astype(compute_dtype)
        w_t = w_t.astype(compute_dtype)

    in_bytes = jnp.dtype(x.dtype).itemsize
    out_bytes = jnp.dtype(out_dtype).itemsize
    sublane = 16 if in_bytes < 4 else 8  # bf16 packs 2 rows per sublane

    # ------------------------------------------------------------------ fast
    # Single-block fast path: the module's own shapes (8x32 -> 16) make the
    # 3-axis grid, accumulator scratch and any padding pure overhead.
    small_bytes = (M * K + K * N + M * N) * max(in_bytes, 4) + N * 4
    if small_bytes <= 2 * 1024 * 1024:
        vmem = pltpu.MemorySpace.VMEM
        return pl.pallas_call(
            _linear_single_block_kernel,
            out_shape=jax.ShapeDtypeStruct((M, N), out_dtype),
            in_specs=[pl.BlockSpec(memory_space=vmem)] * 3,
            out_specs=pl.BlockSpec(memory_space=vmem),
        )(x, w_t, bias2d)

    # ----------------------------------------------------------------- tiled
    vmem_limit = _vmem_limit_bytes()

    tm = _pick_tile(M, sublane, 512, prefer_two_blocks=True)
    tn = _pick_tile(N, 128, 512, prefer_two_blocks=(-(-M // tm) < 2))
    tk = _pick_tile(K, 128, 2048)
    tm, tn, tk = _shrink_to_budget(
        tm, tn, tk, in_bytes, out_bytes, sublane, int(vmem_limit * 0.9)
    )

    grid_m = pl.cdiv(M, tm)
    grid_n = pl.cdiv(N, tn)
    Kp = _round_up(K, tk)
    grid_k = Kp // tk

    # Zero-pad only the reduction axis (required so padded K contributes 0).
    # M / N remainders use partial last blocks: garbage rows/cols never reach
    # valid output elements and out-of-bounds stores are masked.
    if Kp != K:
        x = jnp.pad(x, ((0, 0), (0, Kp - K)))
        w_t = jnp.pad(w_t, ((0, Kp - K), (0, 0)))
        # TODO(synk): fold this K-pad of the (reused) weight into
        # prepare_linear_params for long-lived deployments.

    cost = pl.CostEstimate(
        flops=2 * M * N * Kp,
        transcendentals=0,
        bytes_accessed=(
            x.size * x.dtype.itemsize * grid_n          # x re-read per N block
            + w_t.size * w_t.dtype.itemsize * grid_m    # W re-read per M block
            + bias2d.size * 4 * grid_m
            + M * N * out_bytes
        ),
    )

    return pl.pallas_call(
        _linear_tiled_kernel,
        out_shape=jax.ShapeDtypeStruct((M, N), out_dtype),
        grid_spec=pltpu.PrefetchScalarGridSpec(
            num_scalar_prefetch=0,
            grid=(grid_m, grid_n, grid_k),
            in_specs=[
                pl.BlockSpec((tm, tk), lambda i, j, k: (i, k)),   # x tile
                pl.BlockSpec((tk, tn), lambda i, j, k: (k, j)),   # W^T tile
                pl.BlockSpec((1, tn), lambda i, j, k: (0, j)),    # bias tile
            ],
            out_specs=pl.BlockSpec((tm, tn), lambda i, j, k: (i, j)),
            scratch_shapes=[pltpu.VMEM((tm, tn), jnp.float32)],
        ),
        compiler_params=pltpu.CompilerParams(
            dimension_semantics=("parallel", "parallel", "arbitrary"),
            vmem_limit_bytes=vmem_limit,
        ),
        cost_estimate=cost,
    )(x, w_t, bias2d)


# ----------------------------------------------------------------------------
# Self-test
# ----------------------------------------------------------------------------
if __name__ == "__main__":
    # Shapes consistent with the module: batch=8, input_dim=32, output_dim=16.
    batch, input_dim, output_dim = 8, 32, 16
    key = jax.random.PRNGKey(0)
    kx, kw, kb = jax.random.split(key, 3)

    x = jax.random.normal(kx, (batch, input_dim), dtype=jnp.float32)
    bound = 1.0 / (input_dim ** 0.5)
    weight = jax.random.uniform(
        kw, (output_dim, input_dim), dtype=jnp.float32, minval=-bound, maxval=bound
    )
    bias = jax.random.uniform(
        kb, (output_dim,), dtype=jnp.float32, minval=-bound, maxval=bound
    )

    w_t, b2d = prepare_linear_params(weight, bias)
    out = jax.block_until_ready(module_with_unused_submodules_forward(x, w_t, b2d))

    ref = x @ weight.T + bias
    assert out.shape == (batch, output_dim)
    assert jnp.allclose(out, ref, atol=1e-5, rtol=1e-5), "small-shape mismatch"

    # Also exercise the tiled path (partial M/N blocks, K zero-pad, multi-step
    # reduction) at a larger, non-divisible shape.
    M2, K2, N2 = 640, 1100, 520
    k2x, k2w, k2b = jax.random.split(jax.random.PRNGKey(1), 3)
    x2 = jax.random.normal(k2x, (M2, K2), dtype=jnp.float32)
    w2 = jax.random.normal(k2w, (N2, K2), dtype=jnp.float32) * 0.05
    b2 = jax.random.normal(k2b, (N2,), dtype=jnp.float32)
    w2_t, b2_2d = prepare_linear_params(w2, b2)
    out2 = jax.block_until_ready(
        module_with_unused_submodules_forward(x2, w2_t, b2_2d)
    )
    ref2 = jnp.dot(x2, w2.T, precision=jax.lax.Precision.HIGHEST) + b2
    assert out2.shape == (M2, N2)
    assert jnp.allclose(out2, ref2, atol=5e-4, rtol=5e-4), "tiled-path mismatch"

    print("KERNEL_OK")
</pallas_src>

<mosaic_0001>
module attributes {stable_mosaic.version = 11 : i64} {
  func.func @_linear_single_block_kernel(%arg0: memref<8x32xf32, #tpu.memory_space<vmem>>, %arg1: memref<32x16xf32, #tpu.memory_space<vmem>>, %arg2: memref<1x16xf32, #tpu.memory_space<vmem>>, %arg3: memref<8x16xf32, #tpu.memory_space<vmem>>) attributes {dimension_semantics = [], scalar_prefetch = 0 : i64, scratch_operands = 0 : i64, tpu.core_type = #tpu.core_type<tc>} {
    %c0 = arith.constant 0 : index
    %c0_0 = arith.constant 0 : index
    %0 = vector.load %arg0[%c0, %c0_0] : memref<8x32xf32, #tpu.memory_space<vmem>>, vector<8x32xf32>
    %c0_1 = arith.constant 0 : index
    %c0_2 = arith.constant 0 : index
    %1 = vector.load %arg1[%c0_1, %c0_2] : memref<32x16xf32, #tpu.memory_space<vmem>>, vector<32x16xf32>
    %cst = arith.constant dense<0.000000e+00> : vector<8x16xf32>
    %2 = tpu.matmul %0, %1, %cst {dimension_numbers = #tpu.dot_dimension_numbers<[1], [0], [0], [1], [0, 0, 1, 1], [], []>} : vector<8x32xf32>, vector<32x16xf32>, vector<8x16xf32> -> vector<8x16xf32>
    %c0_3 = arith.constant 0 : index
    %c0_4 = arith.constant 0 : index
    %3 = vector.load %arg2[%c0_3, %c0_4] : memref<1x16xf32, #tpu.memory_space<vmem>>, vector<1x16xf32>
    %4 = vector.broadcast %3 : vector<1x16xf32> to vector<8x16xf32>
    %5 = arith.addf %2, %4 : vector<8x16xf32>
    %c0_5 = arith.constant 0 : index
    %c0_6 = arith.constant 0 : index
    %6 = vector.load %arg3[%c0_5, %c0_6] : memref<8x16xf32, #tpu.memory_space<vmem>>, vector<8x16xf32>
    tpu.vector_store %arg3[%c0_5, %c0_6], %5 {strides = array<i32>} : memref<8x16xf32, #tpu.memory_space<vmem>>, vector<8x16xf32>,
    return
  }
}

</mosaic_0001>

<bundles_post_ra>
// kernel: module_with_unused_submodules_forward.1
= control target key start
LH: loop header
LB: loop body
LE: loop exit
PB: predicated region body
PF: predicated region fallthrough
CT: control target
= control target key end

     0   :  { %v160_v1 = vmov 0.0   ;;  %vm161_vm0 = vmmov 0   ;;  %s204_s0 = inlined_call_operand.vmem [shape: f32[8,32], index: 0, kind: input, shape index: {}]   ;;  %s205_s1 = inlined_call_operand.vmem [shape: f32[32,16], index: 1, kind: input, shape index: {}]   ;;  %s206_s2 = inlined_call_operand.vmem [shape: f32[1,16], index: 2, kind: input, shape index: {}]   ;;  %s207_s3 = inlined_call_operand.hbm [shape: f32[8,16], index: 3, kind: output, shape index: {}]  }
   0x1   :  { %v19_v0 = vld [vmem:[%s205_s1 + $0x18] sm:$0xff]  ;;  %124 = vmatprep.subr.mxu0 %v160_v1  ;;  %v18_v2 = vld [vmem:[%s205_s1 + $0x10] sm:$0xff]  ;;  %132 = vmatprep.mubr.msk.f32.mxu0 %vm161_vm0, %v160_v1 }
   0x2   :  { %125 = vmatpush3.msra.mxu0 %v19_v0 }
   0x3   :  { %8 = vsyncpa [#allocation3], 0  ;;  %126 = vmatprep.subr.mxu0 %v160_v1  ;;  %v17_v3 = vld [vmem:[%s205_s1 + $0x8] sm:$0xff]  ;;  %v16_v4 = vld [vmem:[%s205_s1] sm:$0xff]  ;;  %vm27_vm1 = vcmask 261120   ;;  %s162_s24 = smov [#allocation2]  }
   0x4   :  { %127 = vmatpush3.msra.mxu0 %v18_v2  ;;  %v15_v5 = vld [vmem:[%s204_s0] sm:$0xff]  ;;  %s109_s25 = sshll.u32 %s162_s24, 4  ;;  %vm101_vm2 = vcmask 130048   ;;  %s110_s25 = int_to_ptr.vmem [resolvable:$true] %s109_s25 }
   0x5   :  { %128 = vmatprep.subr.mxu0 %v160_v1  ;;  %v117_v6 = vld [vmem:[%s206_s2] ss:$0 sm:$0xff]  ;;  %s138_s1 = scalar_lea.vmem %s110_s25, 128  ;;  %p143_p1 = scmp.lt.s32.totalorder %s110_s25, %s110_s25 }
   0x6   :  { %129 = vmatpush3.msra.mxu0 %v17_v3  ;;  %p139_p0 = scmp.ne.s32.totalorder %s110_s25, %s138_s1  ;;  %p144_p2 = scmp.lt.s32.totalorder %s138_s1, %s138_s1 }
   0x7   :  { %130 = vmatprep.subr.mxu0 %v160_v1 }
   0x8   :  { %131 = vmatpush3.msra.mxu0 %v16_v4  ;;  %p145_p3 = por %p144_p2, %p143_p1 }
   0x9   :  { %133 = vmatmul.mubr.msk.f32.vlgmr.msra.gmra.mxu0 %vm27_vm1, %v15_v5 }
   0xa   :  { %p146_p4 = pnand %p145_p3, %p139_p0 }
  0xc9   :  { %v97_v7 = vpop.f32.mrf.mxu0 }
  0xca   :  { %v98_v8 = vadd.f32 %v117_v6, %v97_v7 }
  0xcb   :  { %v134_v9 = vpop.f32.mrf.mxu0 }
  0xcc   :  { %102 = vst.msk [vmem:[#allocation2] sm:$0xff] %vm101_vm2, %v98_v8 }
  0xcd   :  { %149 = shalt.err (!%p146_p4)
}
  0xce   :  { %112 = dma.vmem_to_hbm [thread:$0]  %s110_s25, 128, %s207_s3, [#allocation3]  }
  0xcf   :  { %158 = dma.done.wait [#allocation3], 128  }
  0xd0   :  { %159 = vsyncadd [#allocation3], 4294967168 }
  0xd1   :  { %116 = vsyncpa [#allocation3], 1 }

</bundles_post_ra>
